<compile_context>
chip_gen: v6e
topology: v6e:2x2x1
jax: 0.10.0
libtpu: 0.0.40
codegen_flags: <defaults>
</compile_context>

<pallas_src>
import functools

import jax
import jax.numpy as jnp
from jax.experimental import pallas as pl
from jax.experimental.pallas import tpu as pltpu


def _round_up(v, m):
    return ((v + m - 1) // m) * m


def _decoder_kernel(x_ref, zb_ref,
                    w1x_ref, w2_ref, b2_ref, w3_ref, b3_ref,
                    wht_ref, bh_ref,
                    out_ref, *, y_dim):
    """One (batch, row-tile) step of the decoder MLP.

    x_ref   : (1, TM, x_dim)     bf16  streamed target inputs
    zb_ref  : (1, 1, h_pad)      f32   per-batch bias  z @ w1[x_dim:] + b1
    w1x_ref : (x_dim, h_pad)     bf16  first-layer weights (x part)
    w2/b2, w3/b3                 bf16 weights / f32 biases, hidden layers
    wht_ref : (2*y_dim, h_pad)   bf16  fused, transposed [mu|sigma] head
    bh_ref  : (2*y_dim, 1)       f32   fused head bias
    out_ref : (1, 2*y_dim, TM)   f32   transposed [mu|sigma] output (lane-dense)
    """
    x = x_ref[0]                               # (TM, x_dim) bf16
    zb = zb_ref[0]                             # (1, h_pad)  f32

    # layer 1 (z contribution pre-folded into zb); f32 accumulation on the MXU
    h = jnp.dot(x, w1x_ref[...], preferred_element_type=jnp.float32) + zb
    h = jnp.maximum(h, 0.0).astype(jnp.bfloat16)
    # layer 2
    h = jnp.dot(h, w2_ref[...], preferred_element_type=jnp.float32) + b2_ref[...]
    h = jnp.maximum(h, 0.0).astype(jnp.bfloat16)
    # layer 3
    h = jnp.dot(h, w3_ref[...], preferred_element_type=jnp.float32) + b3_ref[...]
    h = jnp.maximum(h, 0.0).astype(jnp.bfloat16)

    # Fused head, produced transposed so the output lane dim is TM:
    # (2y, h_pad) x (TM, h_pad) contracting h_pad -> (2y, TM)
    out = jax.lax.dot_general(
        wht_ref[...], h,
        dimension_numbers=(((1,), (1,)), ((), ())),
        preferred_element_type=jnp.float32)
    out = out + bh_ref[...]                    # (2y, 1) broadcast over lanes

    # sigma = 0.1 + 0.9 * softplus(pre_sigma) on the sigma sublanes only
    feat = jax.lax.broadcasted_iota(jnp.int32, out.shape, dimension=0)
    sig = 0.1 + 0.9 * jax.nn.softplus(out)
    out_ref[0] = jnp.where(feat >= y_dim, sig, out)


def decoder_forward(x, z, params, *, tm=2048):
    """x: (B, N, x_dim) f32, z: (B, z_dim) f32 -> (mu, sigma) each (B, N, y_dim)."""
    B, N, x_dim = x.shape
    h_dim = params["w1"].shape[1]
    y_dim = params["wmu"].shape[1]
    h_pad = _round_up(h_dim, 128)
    f_out = 2 * y_dim
    bf = jnp.bfloat16

    # --- tiny host-side preprocessing (O(B*h) / O(h^2)), f32 -----------------
    w1 = params["w1"]
    zb = (z @ w1[x_dim:] + params["b1"]).reshape(B, 1, h_dim)          # per-batch
    zb = jnp.pad(zb, ((0, 0), (0, 0), (0, h_pad - h_dim)))

    w1x = jnp.pad(w1[:x_dim], ((0, 0), (0, h_pad - h_dim))).astype(bf)
    w2 = jnp.pad(params["w2"], ((0, h_pad - h_dim), (0, h_pad - h_dim))).astype(bf)
    w3 = jnp.pad(params["w3"], ((0, h_pad - h_dim), (0, h_pad - h_dim))).astype(bf)
    b2 = jnp.pad(params["b2"], ((0, 0), (0, h_pad - h_dim)))
    b3 = jnp.pad(params["b3"], ((0, 0), (0, h_pad - h_dim)))
    wh = jnp.concatenate([params["wmu"], params["wsig"]], axis=1)      # (h, 2y)
    wht = jnp.pad(wh, ((0, h_pad - h_dim), (0, 0))).T.astype(bf)       # (2y, h_pad)
    bh = jnp.concatenate([params["bmu"], params["bsig"]], axis=1).reshape(f_out, 1)

    x_bf = x.astype(bf)

    # --- row tiling: big lane-aligned tiles, pad N so any (B, N) works -------
    n8 = max(8, _round_up(N, 8))
    if tm >= n8:
        tm_eff = n8                                   # one full tile per batch
    else:
        tm_eff = max(128, (tm // 128) * 128)          # lane-aligned tile
    # keep >= 2 grid steps so both v7x TensorCores get work when B == 1
    if B == 1 and tm_eff >= n8 and n8 >= 256:
        tm_eff = max(128, _round_up(pl.cdiv(n8, 2), 128))
    n_tiles = pl.cdiv(N, tm_eff)
    n_pad = n_tiles * tm_eff
    if n_pad != N:
        x_bf = jnp.pad(x_bf, ((0, 0), (0, n_pad - N), (0, 0)))

    # --- cost / VMEM accounting ----------------------------------------------
    M = B * n_pad
    layer_flops = x_dim * h_pad + 2 * h_pad * h_pad + h_pad * f_out
    flops = 2 * M * layer_flops
    transcendentals = 2 * M * f_out                    # exp + log1p per softplus
    bytes_accessed = (2 * M * x_dim + 4 * M * f_out + 4 * B * h_pad
                      + 2 * layer_flops + 4 * (2 * h_pad + f_out))

    x_lane = _round_up(x_dim, 128)
    out_sub = _round_up(f_out, 8)
    vmem_est = (2 * tm_eff * x_lane * 2                    # x tile (bf16, 2 bufs)
                + 2 * out_sub * tm_eff * 4                 # out tile (f32, 2 bufs)
                + 2 * 2 * layer_flops                      # bf16 weights, 2 bufs
                + 2 * 4 * (3 * h_pad + f_out)              # f32 biases, 2 bufs
                + 4 * tm_eff * h_pad * 4)                  # intermediates headroom
    vmem_limit = int(min(64 * 1024 * 1024, max(32 * 1024 * 1024, 2 * vmem_est)))

    def full(shape):
        return pl.BlockSpec(shape, lambda b, i, _n=len(shape): (0,) * _n)

    in_specs = [
        pl.BlockSpec((1, tm_eff, x_dim), lambda b, i: (b, i, 0)),   # x tile
        pl.BlockSpec((1, 1, h_pad), lambda b, i: (b, 0, 0)),        # per-batch zb
        full((x_dim, h_pad)),
        full((h_pad, h_pad)), full((1, h_pad)),
        full((h_pad, h_pad)), full((1, h_pad)),
        full((f_out, h_pad)), full((f_out, 1)),
    ]
    out_spec = pl.BlockSpec((1, f_out, tm_eff), lambda b, i: (b, 0, i))

    out = pl.pallas_call(
        functools.partial(_decoder_kernel, y_dim=y_dim),
        out_shape=jax.ShapeDtypeStruct((B, f_out, n_pad), jnp.float32),
        grid=(B, n_tiles),
        in_specs=in_specs,
        out_specs=out_spec,
        compiler_params=pltpu.CompilerParams(
            dimension_semantics=("parallel", "parallel"),
            vmem_limit_bytes=vmem_limit),
        cost_estimate=pl.CostEstimate(
            flops=flops,
            transcendentals=transcendentals,
            bytes_accessed=bytes_accessed),
    )(x_bf, zb, w1x, w2, b2, w3, b3, wht, bh)

    out = out[:, :, :N]                                   # (B, 2y, N)
    mu = jnp.swapaxes(out[:, :y_dim, :], 1, 2)            # (B, N, y)
    sigma = jnp.swapaxes(out[:, y_dim:, :], 1, 2)         # (B, N, y)
    return mu, sigma


def init_decoder_params(key, x_dim, z_dim, h_dim, y_dim):
    """Deterministic init matching nn.Linear defaults: U(-1/sqrt(fan_in), +)."""
    def linear(k, fan_in, fan_out):
        kw, kb = jax.random.split(k)
        bound = 1.0 / jnp.sqrt(fan_in)
        w = jax.random.uniform(kw, (fan_in, fan_out), jnp.float32, -bound, bound)
        b = jax.random.uniform(kb, (1, fan_out), jnp.float32, -bound, bound)
        return w, b

    keys = jax.random.split(key, 5)
    w1, b1 = linear(keys[0], x_dim + z_dim, h_dim)
    w2, b2 = linear(keys[1], h_dim, h_dim)
    w3, b3 = linear(keys[2], h_dim, h_dim)
    wmu, bmu = linear(keys[3], h_dim, y_dim)
    wsig, bsig = linear(keys[4], h_dim, y_dim)
    return dict(w1=w1, b1=b1, w2=w2, b2=b2, w3=w3, b3=b3,
                wmu=wmu, bmu=bmu, wsig=wsig, bsig=bsig)


def decoder_reference(x, z, p):
    """Pure-JAX f32 reference for correctness checking."""
    B, N, x_dim = x.shape
    z_rep = jnp.broadcast_to(z[:, None, :], (B, N, z.shape[-1]))
    xz = jnp.concatenate([x, z_rep], axis=-1).reshape(B * N, -1)
    h = jnp.maximum(xz @ p["w1"] + p["b1"], 0.0)
    h = jnp.maximum(h @ p["w2"] + p["b2"], 0.0)
    h = jnp.maximum(h @ p["w3"] + p["b3"], 0.0)
    mu = h @ p["wmu"] + p["bmu"]
    sigma = 0.1 + 0.9 * jax.nn.softplus(h @ p["wsig"] + p["bsig"])
    y_dim = p["wmu"].shape[1]
    return mu.reshape(B, N, y_dim), sigma.reshape(B, N, y_dim)


if __name__ == "__main__":
    # Small shapes consistent with the module's forward signature.
    B, N = 2, 8           # batch_size, num_points
    x_dim, z_dim, h_dim, y_dim = 4, 8, 32, 4

    key = jax.random.PRNGKey(0)
    kx, kz, kp = jax.random.split(key, 3)
    x = jax.random.normal(kx, (B, N, x_dim), jnp.float32)
    z = jax.random.normal(kz, (B, z_dim), jnp.float32)
    params = init_decoder_params(kp, x_dim, z_dim, h_dim, y_dim)

    fwd = jax.jit(functools.partial(decoder_forward, tm=2048))
    mu, sigma = fwd(x, z, params)
    jax.block_until_ready((mu, sigma))

    mu_ref, sigma_ref = decoder_reference(x, z, params)
    assert mu.shape == (B, N, y_dim) and sigma.shape == (B, N, y_dim)
    # bf16 MXU operands with f32 accumulation -> looser tolerances than pure f32
    assert jnp.allclose(mu, mu_ref, atol=5e-2, rtol=5e-2), "mu mismatch"
    assert jnp.allclose(sigma, sigma_ref, atol=5e-2, rtol=5e-2), "sigma mismatch"
    assert bool(jnp.all(sigma > 0.0999)), "sigma lower bound violated"

    print("KERNEL_OK")
</pallas_src>

<mosaic_0001>
module attributes {stable_mosaic.version = 11 : i64} {
  func.func @_decoder_kernel(%arg0: i32, %arg1: i32, %arg2: memref<1x8x4xbf16, #tpu.memory_space<vmem>>, %arg3: memref<1x1x128xf32, #tpu.memory_space<vmem>>, %arg4: memref<4x128xbf16, #tpu.memory_space<vmem>>, %arg5: memref<128x128xbf16, #tpu.memory_space<vmem>>, %arg6: memref<1x128xf32, #tpu.memory_space<vmem>>, %arg7: memref<128x128xbf16, #tpu.memory_space<vmem>>, %arg8: memref<1x128xf32, #tpu.memory_space<vmem>>, %arg9: memref<8x128xbf16, #tpu.memory_space<vmem>>, %arg10: memref<8x1xf32, #tpu.memory_space<vmem>>, %arg11: memref<1x8x8xf32, #tpu.memory_space<vmem>>) attributes {dimension_semantics = [#tpu.dimension_semantics<parallel>, #tpu.dimension_semantics<parallel>], iteration_bounds = array<i64: 2, 1>, scalar_prefetch = 0 : i64, scratch_operands = 0 : i64, tpu.core_type = #tpu.core_type<tc>, window_params = [{transform_indices = @transform_0, window_bounds = array<i64: 1, 8, 4>}, {transform_indices = @transform_1, window_bounds = array<i64: 1, 1, 128>}, {pipeline_mode = #tpu.pipeline_mode<synchronous>, transform_indices = @transform_2, window_bounds = array<i64: 4, 128>}, {pipeline_mode = #tpu.pipeline_mode<synchronous>, transform_indices = @transform_3, window_bounds = array<i64: 128, 128>}, {pipeline_mode = #tpu.pipeline_mode<synchronous>, transform_indices = @transform_4, window_bounds = array<i64: 1, 128>}, {pipeline_mode = #tpu.pipeline_mode<synchronous>, transform_indices = @transform_5, window_bounds = array<i64: 128, 128>}, {pipeline_mode = #tpu.pipeline_mode<synchronous>, transform_indices = @transform_6, window_bounds = array<i64: 1, 128>}, {pipeline_mode = #tpu.pipeline_mode<synchronous>, transform_indices = @transform_7, window_bounds = array<i64: 8, 128>}, {pipeline_mode = #tpu.pipeline_mode<synchronous>, transform_indices = @transform_8, window_bounds = array<i64: 8, 1>}, {transform_indices = @transform_9, window_bounds = array<i64: 1, 8, 8>}]} {
    %c0 = arith.constant 0 : index
    %c0_0 = arith.constant 0 : index
    %c0_1 = arith.constant 0 : index
    %0 = vector.load %arg2[%c0, %c0_0, %c0_1] : memref<1x8x4xbf16, #tpu.memory_space<vmem>>, vector<1x8x4xbf16>
    %1 = vector.shape_cast %0 : vector<1x8x4xbf16> to vector<8x4xbf16>
    %c0_2 = arith.constant 0 : index
    %c0_3 = arith.constant 0 : index
    %c0_4 = arith.constant 0 : index
    %2 = vector.load %arg3[%c0_2, %c0_3, %c0_4] : memref<1x1x128xf32, #tpu.memory_space<vmem>>, vector<1x1x128xf32>
    %3 = vector.shape_cast %2 : vector<1x1x128xf32> to vector<1x128xf32>
    %c0_5 = arith.constant 0 : index
    %c0_6 = arith.constant 0 : index
    %4 = vector.load %arg4[%c0_5, %c0_6] : memref<4x128xbf16, #tpu.memory_space<vmem>>, vector<4x128xbf16>
    %cst = arith.constant dense<0.000000e+00> : vector<8x128xf32>
    %5 = tpu.matmul %1, %4, %cst {dimension_numbers = #tpu.dot_dimension_numbers<[1], [0], [0], [1], [0, 0, 1, 1], [], []>} : vector<8x4xbf16>, vector<4x128xbf16>, vector<8x128xf32> -> vector<8x128xf32>
    %6 = vector.broadcast %3 : vector<1x128xf32> to vector<8x128xf32>
    %7 = arith.addf %5, %6 : vector<8x128xf32>
    %cst_7 = arith.constant 0.000000e+00 : f32
    %8 = vector.broadcast %cst_7 : f32 to vector<8x128xf32>
    %9 = arith.maximumf %7, %8 : vector<8x128xf32>
    %10 = arith.truncf %9 : vector<8x128xf32> to vector<8x128xbf16>
    %c0_8 = arith.constant 0 : index
    %c0_9 = arith.constant 0 : index
    %11 = vector.load %arg5[%c0_8, %c0_9] : memref<128x128xbf16, #tpu.memory_space<vmem>>, vector<128x128xbf16>
    %cst_10 = arith.constant dense<0.000000e+00> : vector<8x128xf32>
    %12 = tpu.matmul %10, %11, %cst_10 {dimension_numbers = #tpu.dot_dimension_numbers<[1], [0], [0], [1], [0, 0, 1, 1], [], []>} : vector<8x128xbf16>, vector<128x128xbf16>, vector<8x128xf32> -> vector<8x128xf32>
    %c0_11 = arith.constant 0 : index
    %c0_12 = arith.constant 0 : index
    %13 = vector.load %arg6[%c0_11, %c0_12] : memref<1x128xf32, #tpu.memory_space<vmem>>, vector<1x128xf32>
    %14 = vector.broadcast %13 : vector<1x128xf32> to vector<8x128xf32>
    %15 = arith.addf %12, %14 : vector<8x128xf32>
    %cst_13 = arith.constant 0.000000e+00 : f32
    %16 = vector.broadcast %cst_13 : f32 to vector<8x128xf32>
    %17 = arith.maximumf %15, %16 : vector<8x128xf32>
    %18 = arith.truncf %17 : vector<8x128xf32> to vector<8x128xbf16>
    %c0_14 = arith.constant 0 : index
    %c0_15 = arith.constant 0 : index
    %19 = vector.load %arg7[%c0_14, %c0_15] : memref<128x128xbf16, #tpu.memory_space<vmem>>, vector<128x128xbf16>
    %cst_16 = arith.constant dense<0.000000e+00> : vector<8x128xf32>
    %20 = tpu.matmul %18, %19, %cst_16 {dimension_numbers = #tpu.dot_dimension_numbers<[1], [0], [0], [1], [0, 0, 1, 1], [], []>} : vector<8x128xbf16>, vector<128x128xbf16>, vector<8x128xf32> -> vector<8x128xf32>
    %c0_17 = arith.constant 0 : index
    %c0_18 = arith.constant 0 : index
    %21 = vector.load %arg8[%c0_17, %c0_18] : memref<1x128xf32, #tpu.memory_space<vmem>>, vector<1x128xf32>
    %22 = vector.broadcast %21 : vector<1x128xf32> to vector<8x128xf32>
    %23 = arith.addf %20, %22 : vector<8x128xf32>
    %cst_19 = arith.constant 0.000000e+00 : f32
    %24 = vector.broadcast %cst_19 : f32 to vector<8x128xf32>
    %25 = arith.maximumf %23, %24 : vector<8x128xf32>
    %26 = arith.truncf %25 : vector<8x128xf32> to vector<8x128xbf16>
    %c0_20 = arith.constant 0 : index
    %c0_21 = arith.constant 0 : index
    %27 = vector.load %arg9[%c0_20, %c0_21] : memref<8x128xbf16, #tpu.memory_space<vmem>>, vector<8x128xbf16>
    %cst_22 = arith.constant dense<0.000000e+00> : vector<8x8xf32>
    %28 = tpu.matmul %27, %26, %cst_22 {dimension_numbers = #tpu.dot_dimension_numbers<[1], [1], [0], [0], [0, 0, 1, 0], [], []>} : vector<8x128xbf16>, vector<8x128xbf16>, vector<8x8xf32> -> vector<8x8xf32>
    %c0_23 = arith.constant 0 : index
    %c0_24 = arith.constant 0 : index
    %29 = vector.load %arg10[%c0_23, %c0_24] : memref<8x1xf32, #tpu.memory_space<vmem>>, vector<8x1xf32>
    %30 = vector.broadcast %29 : vector<8x1xf32> to vector<8x8xf32>
    %31 = arith.addf %28, %30 : vector<8x8xf32>
    %32 = tpu.iota {dimensions = array<i32: 0>} : vector<8x8xi32>
    %cst_25 = arith.constant 0.000000e+00 : f32
    %33 = vector.broadcast %cst_25 : f32 to vector<8x8xf32>
    %34 = arith.maximumf %31, %33 : vector<8x8xf32>
    %35 = vector.broadcast %cst_25 : f32 to vector<8x8xf32>
    %36 = arith.subf %31, %35 : vector<8x8xf32>
    %37 = arith.cmpf one, %36, %36 : vector<8x8xf32>
    %38 = vector.broadcast %cst_25 : f32 to vector<8x8xf32>
    %39 = arith.addf %31, %38 : vector<8x8xf32>
    %40 = math.absf %36 : vector<8x8xf32>
    %cst_26 = arith.constant 0.000000e+00 : f32
    %41 = vector.broadcast %cst_26 : f32 to vector<8x8xf32>
    %42 = arith.subf %41, %40 : vector<8x8xf32>
    %43 = math.exp %42 : vector<8x8xf32>
    %44 = math.log1p %43 : vector<8x8xf32>
    %45 = arith.addf %34, %44 : vector<8x8xf32>
    %46 = arith.select %37, %39, %45 : vector<8x8xi1>, vector<8x8xf32>
    %cst_27 = arith.constant 0.899999976 : f32
    %47 = vector.broadcast %cst_27 : f32 to vector<8x8xf32>
    %48 = arith.mulf %47, %46 : vector<8x8xf32>
    %cst_28 = arith.constant 1.000000e-01 : f32
    %49 = vector.broadcast %cst_28 : f32 to vector<8x8xf32>
    %50 = arith.addf %49, %48 : vector<8x8xf32>
    %c4_i32 = arith.constant 4 : i32
    %51 = vector.broadcast %c4_i32 : i32 to vector<8x8xi32>
    %52 = arith.cmpi sge, %32, %51 : vector<8x8xi32>
    %53 = arith.select %52, %50, %31 : vector<8x8xi1>, vector<8x8xf32>
    %c0_29 = arith.constant 0 : index
    %c0_30 = arith.constant 0 : index
    %c0_31 = arith.constant 0 : index
    %54 = vector.load %arg11[%c0_29, %c0_30, %c0_31] : memref<1x8x8xf32, #tpu.memory_space<vmem>>, vector<1x8x8xf32>
    %55 = vector.shape_cast %54 : vector<1x8x8xf32> to vector<8x8xf32>
    %56 = vector.shape_cast %53 : vector<8x8xf32> to vector<1x8x8xf32>
    tpu.vector_store %arg11[%c0_29, %c0_30, %c0_31], %56 {strides = array<i32>} : memref<1x8x8xf32, #tpu.memory_space<vmem>>, vector<1x8x8xf32>,
    return
  }
  func.func @transform_0(%arg0: i32, %arg1: i32) -> (i32, i32, i32) {
    %c0_i32 = arith.constant 0 : i32
    %c0_i32_0 = arith.constant 0 : i32
    return %arg0, %arg1, %c0_i32 : i32, i32, i32
  }
  func.func @transform_1(%arg0: i32, %arg1: i32) -> (i32, i32, i32) {
    %c0_i32 = arith.constant 0 : i32
    %c0_i32_0 = arith.constant 0 : i32
    %c0_i32_1 = arith.constant 0 : i32
    return %arg0, %c0_i32, %c0_i32_0 : i32, i32, i32
  }
  func.func @transform_2(%arg0: i32, %arg1: i32) -> (i32, i32) {
    %c0_i32 = arith.constant 0 : i32
    %c0_i32_0 = arith.constant 0 : i32
    %c0_i32_1 = arith.constant 0 : i32
    return %c0_i32, %c0_i32_0 : i32, i32
  }
  func.func @transform_3(%arg0: i32, %arg1: i32) -> (i32, i32) {
    %c0_i32 = arith.constant 0 : i32
    %c0_i32_0 = arith.constant 0 : i32
    %c0_i32_1 = arith.constant 0 : i32
    return %c0_i32, %c0_i32_0 : i32, i32
  }
  func.func @transform_4(%arg0: i32, %arg1: i32) -> (i32, i32) {
    %c0_i32 = arith.constant 0 : i32
    %c0_i32_0 = arith.constant 0 : i32
    %c0_i32_1 = arith.constant 0 : i32
    return %c0_i32, %c0_i32_0 : i32, i32
  }
  func.func @transform_5(%arg0: i32, %arg1: i32) -> (i32, i32) {
    %c0_i32 = arith.constant 0 : i32
    %c0_i32_0 = arith.constant 0 : i32
    %c0_i32_1 = arith.constant 0 : i32
    return %c0_i32, %c0_i32_0 : i32, i32
  }
  func.func @transform_6(%arg0: i32, %arg1: i32) -> (i32, i32) {
    %c0_i32 = arith.constant 0 : i32
    %c0_i32_0 = arith.constant 0 : i32
    %c0_i32_1 = arith.constant 0 : i32
    return %c0_i32, %c0_i32_0 : i32, i32
  }
  func.func @transform_7(%arg0: i32, %arg1: i32) -> (i32, i32) {
    %c0_i32 = arith.constant 0 : i32
    %c0_i32_0 = arith.constant 0 : i32
    %c0_i32_1 = arith.constant 0 : i32
    return %c0_i32, %c0_i32_0 : i32, i32
  }
  func.func @transform_8(%arg0: i32, %arg1: i32) -> (i32, i32) {
    %c0_i32 = arith.constant 0 : i32
    %c0_i32_0 = arith.constant 0 : i32
    %c0_i32_1 = arith.constant 0 : i32
    return %c0_i32, %c0_i32_0 : i32, i32
  }
  func.func @transform_9(%arg0: i32, %arg1: i32) -> (i32, i32, i32) {
    %c0_i32 = arith.constant 0 : i32
    %c0_i32_0 = arith.constant 0 : i32
    return %arg0, %c0_i32, %arg1 : i32, i32, i32
  }
}

</mosaic_0001>

<bundles_post_ra>
// kernel: decoder_forward.1
= control target key start
LH: loop header
LB: loop body
LE: loop exit
PB: predicated region body
PF: predicated region fallthrough
CT: control target
= control target key end

     0   :  { %s1043_s30 = smov 0   ;;  %s1045_s10 = smov 0   ;;  %s1173_s0 = inlined_call_operand.vmem [shape: bf16[2,8,4], index: 0, kind: input, shape index: {}]   ;;  %s1174_s1 = inlined_call_operand.vmem [shape: f32[2,1,128], index: 1, kind: input, shape index: {}]   ;;  %s1175_s2 = inlined_call_operand.vmem [shape: bf16[4,128], index: 2, kind: input, shape index: {}]   ;;  %s1176_s3 = inlined_call_operand.vmem [shape: bf16[128,128], index: 3, kind: input, shape index: {}]   ;;  %s1177_s4 = inlined_call_operand.vmem [shape: f32[1,128], index: 4, kind: input, shape index: {}]   ;;  %s1178_s5 = inlined_call_operand.vmem [shape: bf16[128,128], index: 5, kind: input, shape index: {}]   ;;  %s1179_s6 = inlined_call_operand.vmem [shape: f32[1,128], index: 6, kind: input, shape index: {}]   ;;  %s1180_s7 = inlined_call_operand.vmem [shape: bf16[8,128], index: 7, kind: input, shape index: {}]   ;;  %s1181_s8 = inlined_call_operand.vmem [shape: f32[8,1], index: 8, kind: input, shape index: {}]   ;;  %s1182_s9 = inlined_call_operand.vmem [shape: f32[2,8,8], index: 9, kind: output, shape index: {}]  }
   0x1   :  { %s1047_s11 = smov 0  }
   0x2 LB: > { %s31_s12 = sadd.s32 1, %s984_s10  ;;  %p819_p0 = scmp.ge.s32.totalorder %s988_s11, 1  ;;  %s988_s11 = sphi %s1047_s11, %s19_s11   ;;  %s984_s10 = sphi %s1045_s10, %s1184_s10   ;;  %s980_s30 = sphi %s1043_s30, %s1183_s30  }
   0x3   : > { %p33_p1 = scmp.ge.s32.totalorder %s31_s12, 2  ;;  %p313_p2 = scmp.lt.s32.totalorder %s988_s11, 3 }
   0x5   : > { %s1186_s12 = smov (%p33_p1, %s31_s12), 0  ;;  %p314_p3 = pnand %p819_p0, %p313_p2 }
   0x6   : > { %p356_p4 = scmp.lt.s32.totalorder (!%p314_p3), %s980_s30, 1 }
   0x7   : > { %317 = sbr.rel (%p314_p3) target bundleno = 864 (0x360), region = 56 }
   0xc   : > { %v376_v0 = vld [vmem:[%s1175_s2] sm:$0x3]  ;;  %vm387_vm0 = vcmask 1041408   ;;  %v990_v1 = vmov 0.0   ;;  %vm991_vm1 = vmmov 0   ;;  %s1188_s30 = smov (!%p356_p4, %s980_s30), 1  ;;  %v706_v62 = vlaneseq }
   0xd   : > { %866 = vmatprep.subr.bf16.mxu0 %v990_v1  ;;  %v389_v2 = vsel %vm387_vm0, %v376_v0, 0  ;;  %868 = vmatprep.mubr.msk.bf16.mxu0 %vm991_vm1, %v990_v1  ;;  %v946_v3 = vld [vmem:[%s1176_s3 + $0x38] sm:$0xff]   ;;  %s820_s17 = sshll.u32 %s1188_s30, 2  ;;  %vm383_vm2 = vcmask 31744   ;;  %v947_v4 = vld [vmem:[%s1176_s3 + $0x30] sm:$0xff]   ;;  %v948_v6 = vld [vmem:[%s1176_s3 + $0x28] sm:$0xff]   ;;  %s365_s15 = scalar_lea.vmem %s1174_s1, %s1188_s30 }
   0xe   : > { %867 = vmatpush3.bf16.msra.mxu0 %v389_v2  ;;  %872 = vmatprep.subr.bf16.mxu1 %v990_v1  ;;  %s362_s22 = scalar_lea.vmem %s1173_s0, %s820_s17  ;;  %v949_v7 = vld [vmem:[%s1176_s3 + $0x20] sm:$0xff]   ;;  %v950_v8 = vld [vmem:[%s1176_s3 + $0x18] sm:$0xff]   ;;  %v951_v9 = vld [vmem:[%s1176_s3 + $0x10] sm:$0xff]   ;;  %v992_v37 = vmov 0   ;;  %s821_s28 = sshll.u32 %s1188_s30, 3  ;;  %vm730_vm6 = vcmask 64512  }
   0xf   : > { %888 = vmatprep.mubr.msk.bf16.mxu1 %vm991_vm1, %v990_v1  ;;  %892 = vmatprep.subr.bf16.mxu0 %v990_v1  ;;  %v374_v5 = vld [vmem:[%s362_s22] sm:$0xf]  ;;  %v952_v10 = vld [vmem:[%s1176_s3 + $0x8] sm:$0xff]   ;;  %v954_v12 = vld [vmem:[%s1178_s5 + $0x38] sm:$0xff]   ;;  %s372_s14 = scalar_lea.vmem %s1182_s9, %s821_s28 }
  0x10   : > { %873 = vmatpush3.bf16.msra.mxu1 %v946_v3  ;;  %v953_v11 = vld [vmem:[%s1176_s3] sm:$0xff]   ;;  %v955_v13 = vld [vmem:[%s1178_s5 + $0x30] sm:$0xff]   ;;  %v956_v14 = vld [vmem:[%s1178_s5 + $0x28] sm:$0xff]   ;;  %945 = vset.pattern.permute.xlu0 %v992_v37  ;;  %v707_v3 = vshrl.u32 %v706_v62, 7 }
  0x11   : > { %874 = vmatprep.subr.bf16.mxu1 %v990_v1  ;;  %869 = vmatmul.mubr.msk.bf16.vlgmr.msra.gmra.mxu0 %vm383_vm2, %v374_v5  ;;  %v957_v15 = vld [vmem:[%s1178_s5 + $0x20] sm:$0xff]   ;;  %v958_v16 = vld [vmem:[%s1178_s5 + $0x18] sm:$0xff]   ;;  %v959_v17 = vld [vmem:[%s1178_s5 + $0x10] sm:$0xff]  }
  0x12   : > { %908 = vmatprep.mubr.msk.bf16.mxu0 %vm991_vm1, %v990_v1  ;;  %893 = vmatpush3.bf16.msra.mxu0 %v954_v12  ;;  %v822_v18 = vld [vmem:[%s365_s15] ss:$0 sm:$0xff]  ;;  %v960_v26 = vld [vmem:[%s1178_s5 + $0x8] sm:$0xff]   ;;  %vm728_vm5 = vcmp.ge.s32.totalorder %v707_v3, 4 }
  0x13   : > { %894 = vmatprep.subr.bf16.mxu0 %v990_v1  ;;  %v961_v27 = vld [vmem:[%s1178_s5] sm:$0xff]  }
  0x14   : > { %875 = vmatpush3.bf16.msra.mxu1 %v947_v4  ;;  %v824_v28 = vld [vmem:[%s1177_s4] ss:$0 sm:$0xff] }
  0x15   : > { %876 = vmatprep.subr.bf16.mxu1 %v990_v1  ;;  %v660_v36 = vld [vmem:[%s1181_s8] sm:$0xff] }
  0x16   : > { %895 = vmatpush3.bf16.msra.mxu0 %v955_v13  ;;  %663 = vperm.xlu0 %945, %v660_v36   ;;  %v833_v38 = vld [vmem:[%s1179_s6] ss:$0 sm:$0xff] }
  0x17   : > { %896 = vmatprep.subr.bf16.mxu0 %v990_v1  ;;  %v659_v46 = vld [vmem:[%s1180_s7] sm:$0xf] }
  0x18   : > { %877 = vmatpush3.bf16.msra.mxu1 %v948_v6 }
  0x19   : > { %878 = vmatprep.subr.bf16.mxu1 %v990_v1 }
  0x1a   : > { %897 = vmatpush3.bf16.msra.mxu0 %v956_v14 }
  0x1b   : > { %898 = vmatprep.subr.bf16.mxu0 %v990_v1 }
  0x1c   : > { %879 = vmatpush3.bf16.msra.mxu1 %v949_v7 }
  0x1d   : > { %880 = vmatprep.subr.bf16.mxu1 %v990_v1 }
  0x1e   : > { %899 = vmatpush3.bf16.msra.mxu0 %v957_v15 }
  0x1f   : > { %900 = vmatprep.subr.bf16.mxu0 %v990_v1 }
  0x20   : > { %881 = vmatpush3.bf16.msra.mxu1 %v950_v8 }
  0x21   : > { %882 = vmatprep.subr.bf16.mxu1 %v990_v1 }
  0x22   : > { %901 = vmatpush3.bf16.msra.mxu0 %v958_v16 }
  0x23   : > { %902 = vmatprep.subr.bf16.mxu0 %v990_v1 }
  0x24   : > { %883 = vmatpush3.bf16.msra.mxu1 %v951_v9 }
  0x25   : > { %884 = vmatprep.subr.bf16.mxu1 %v990_v1 }
  0x26   : > { %903 = vmatpush3.bf16.msra.mxu0 %v959_v17 }
  0x27   : > { %904 = vmatprep.subr.bf16.mxu0 %v990_v1 }
  0x28   : > { %885 = vmatpush3.bf16.msra.mxu1 %v952_v10 }
  0x29   : > { %886 = vmatprep.subr.bf16.mxu1 %v990_v1 }
  0x2a   : > { %905 = vmatpush3.bf16.msra.mxu0 %v960_v26 }
  0x2b   : > { %906 = vmatprep.subr.bf16.mxu0 %v990_v1 }
  0x2c   : > { %887 = vmatpush3.bf16.msra.mxu1 %v953_v11 }
  0x2d   : > { %912 = vmatprep.subr.bf16.mxu1 %v990_v1 }
  0x2e   : > { %907 = vmatpush3.bf16.msra.mxu0 %v961_v27 }
  0x91   : > { %v664_v47 = vpop.permute.xlu0 %663 }
  0xd1   : > { %v425_v19 = vpop.f32.mrf.mxu0 }
  0xd2   : > { %v426_v20 = vadd.f32 %v822_v18, %v425_v19 }
  0xd3   : > { %v870_v21 = vpop.f32.mrf.mxu0 }
  0xd4   : > { %v431_v22 = vmax.f32 %v426_v20, 0.0 }
  0xd5   : > { %v428_v23 = vpop.f32.mrf.mxu0 }
  0xd6   : > { %v432_v24 = vpack.c.bf16 %v431_v22, %v431_v22 }
  0xd7   : > { %v871_v25 = vpop.f32.mrf.mxu0 }
  0xd8   : > { %889 = vmatmul.mubr.bf16.vlgmr.msra.gmra.mxu1 %v432_v24 }
  0xd9   : > { %914 = vmatprep.mubr.msk.bf16.mxu1 %vm991_vm1, %v990_v1 }
 0x198   : > { %v538_v29 = vpop.f32.mrf.mxu1 }
 0x199   : > { %v539_v30 = vadd.f32 %v824_v28, %v538_v29 }
 0x19a   : > { %v890_v31 = vpop.f32.mrf.mxu1 }
 0x19b   : > { %v544_v32 = vmax.f32 %v539_v30, 0.0 }
 0x19c   : > { %v541_v33 = vpop.f32.mrf.mxu1 }
 0x19d   : > { %v545_v34 = vpack.c.bf16 %v544_v32, %v544_v32 }
 0x19e   : > { %v891_v35 = vpop.f32.mrf.mxu1 }
 0x19f   : > { %909 = vmatmul.mubr.bf16.vlgmr.msra.gmra.mxu0 %v545_v34 }
 0x25f   : > { %v651_v39 = vpop.f32.mrf.mxu0 }
 0x260   : > { %v652_v40 = vadd.f32 %v833_v38, %v651_v39 }
 0x261   : > { %v910_v41 = vpop.f32.mrf.mxu0 }
 0x262   : > { %v657_v42 = vmax.f32 %v652_v40, 0.0 }
 0x263   : > { %v654_v43 = vpop.f32.mrf.mxu0 }
 0x264   : > { %v658_v44 = vpack.c.bf16 %v657_v42, %v657_v42 }
 0x265   : > { %v911_v45 = vpop.f32.mrf.mxu0 }
 0x266   : > { %913 = vmatpush3.bf16.xpose.msra.mxu1 %v658_v44 }
 0x26d   : > { %915 = vmatmul.mubr.bf16.vlgmr.msra.gmra.mxu1 %v659_v46 }
 0x32d   : > { %v700_v48 = vpop.f32.mrf.mxu1 }
 0x32e   : > { %v701_v49 = vadd.f32 %v700_v48, %v664_v47 }
 0x32f   : > { %v916_v50 = vpop.f32.mrf.mxu1 }
 0x330   : > { %v711_v51 = vand.u32 2147483647, %v701_v49  ;;  %v708_v1 = vmax.f32 %v701_v49, 0.0  ;;  %vm709_vm4 = vcmp.ne.f32.partialorder %v701_v49, %v701_v49 }
 0x331   : > { %v703_v52 = vpop.f32.mrf.mxu1 }
 0x332   : > { %v712_v53 = vsub.f32 0.0, %v711_v51 }
 0x333   : > { %v917_v54 = vpop.f32.mrf.mxu1 }
 0x334   : > { %v713_v55 = vmul.f32 1.442695, %v712_v53 }
 0x336   : > { %962 = vpow2.f32 %v713_v55 }
 0x343   : > { %v963_v56 = vpop.eup %962 }
 0x344   : > { %v715_v57 = vadd.f32 1.0, %v963_v56  ;;  %v718_v58 = vmul.f32 -0.5, %v963_v56  ;;  %v721_v60 = vand.u32 2147483647, %v963_v56 }
 0x346   : > { %964 = vlog2.f32 %v715_v57  ;;  %v719_v59 = vadd.f32 1.0, %v718_v58  ;;  %vm722_vm3 = vcmp.lt.f32.partialorder %v721_v60, 0.0004427343 }
 0x348   : > { %v720_v0 = vmul.f32 %v963_v56, %v719_v59 }
 0x353   : > { %v965_v61 = vpop.eup %964 }
 0x354   : > { %v717_v63 = vmul.f32 0.6931472, %v965_v61 }
 0x356   : > { %v723_v2 = vsel %vm722_vm3, %v720_v0, %v717_v63 }
 0x357   : > { %v724_v4 = vadd.f32 %v723_v2, %v708_v1 }
 0x359   : > { %v725_v5 = vsel %vm709_vm4, %v701_v49, %v724_v4 }
 0x35a   : > { %v726_v6 = vmul.f32 0.9, %v725_v5 }
 0x35c   : > { %v727_v7 = vadd.f32 0.1, %v726_v6 }
 0x35e   : > { %v729_v8 = vsel %vm728_vm5, %v727_v7, %v701_v49 }
 0x35f   : > { %731 = vst.msk [vmem:[%s372_s14] sm:$0xff] %vm730_vm6, %v729_v8 }
 0x360 PF: > { %s19_s11 = sadd.s32 1, %s988_s11   ;;  %s1183_s30 = smov %s984_s10 }
 0x361   : > { %p16_p5 = scmp.ge.s32.totalorder %s19_s11, 4   ;;  %s1184_s10 = smov %s1186_s12 }
 0x363   :  { %18 = sbr.rel (!%p16_p5) target bundleno = 2 (0x2), region = 89 }

</bundles_post_ra>
